<compile_context>
chip_gen: v6e
topology: v6e:2x2x1
jax: 0.10.0
libtpu: 0.0.40
codegen_flags: <defaults>
</compile_context>

<pallas_src>
import functools

import jax
import jax.numpy as jnp
from jax import lax
from jax.experimental import pallas as pl
from jax.experimental.pallas import tpu as pltpu

K = 7
PAD = 3


def _spatial_attn_kernel(band_ref, rsel_ref, bias_ref, x_ref, o_ref,
                         sum_acc, max_acc, *, c_total, c_chunk):
    # band_ref : VMEM (2, K, W, W) f32  banded column-tap matrices
    #            (avg band pre-scaled by 1/C so the channel *sum* can be used)
    # rsel_ref : VMEM (K, H, H) f32     row (ky) selection/shift matrices
    # bias_ref : SMEM (1,) f32
    # x_ref    : VMEM (1, c_chunk, H, W) native dtype, one channel chunk
    # o_ref    : VMEM (1, 1, H, W)
    # sum_acc / max_acc : VMEM (H, W) f32 scratch accumulators
    chunk = pl.program_id(1)
    n_chunks = pl.num_programs(1)
    H, W = x_ref.shape[2], x_ref.shape[3]

    @pl.when(chunk == 0)
    def _init():
        sum_acc[...] = jnp.zeros_like(sum_acc)
        max_acc[...] = jnp.full_like(max_acc, -jnp.inf)

    # Fused, vectorized channel reduction over this chunk (single pass).
    xv = x_ref[0].astype(jnp.float32)                      # (c_chunk, H, W)
    if c_total % c_chunk == 0:
        s = jnp.sum(xv, axis=0)
        m = jnp.max(xv, axis=0)
    else:
        # The last chunk's out-of-bounds rows are undefined: mask them.
        c_valid = jnp.minimum(c_chunk, c_total - chunk * c_chunk)
        cid = lax.broadcasted_iota(jnp.int32, (c_chunk, H, W), 0)
        valid = cid < c_valid
        s = jnp.sum(jnp.where(valid, xv, 0.0), axis=0)
        m = jnp.max(jnp.where(valid, xv, -jnp.inf), axis=0)

    sum_acc[...] += s
    max_acc[...] = jnp.maximum(max_acc[...], m)

    @pl.when(chunk == n_chunks - 1)
    def _finalize():
        sm = sum_acc[...]          # channel sum; 1/C folded into band_ref[0]
        mx = max_acc[...]
        acc = jnp.full((H, W), bias_ref[0], dtype=jnp.float32)
        # 7x7 conv (padding=3) as MXU matmuls: per ky, the kx taps are a
        # banded (W,W) matmul and the ky offset an (H,H) selection matmul.
        # Boundary zero-padding is implicit in the banded/selection matrices.
        for ky in range(K):
            mid = (jnp.dot(sm, band_ref[0, ky],
                           preferred_element_type=jnp.float32) +
                   jnp.dot(mx, band_ref[1, ky],
                           preferred_element_type=jnp.float32))
            acc = acc + jnp.dot(rsel_ref[ky], mid,
                                preferred_element_type=jnp.float32)
        o_ref[0, 0] = jax.nn.sigmoid(acc).astype(o_ref.dtype)


def spatial_attention(x, weight, bias, *, c_chunk=None):
    """x: (N,C,H,W) any float dtype; weight: (1,2,7,7); bias: (1,).

    Returns (N,1,H,W) in x.dtype, matching
    sigmoid(conv2d(cat[mean_c(x), max_c(x)], weight, bias, padding=3)).
    """
    N, C, H, W = x.shape
    wf = weight.astype(jnp.float32)[0]            # (2, K, K), [avg, max]
    bf = bias.astype(jnp.float32)                 # (1,)

    # Banded column matrices: band[c, ky, i, w] = wf[c, ky, i - w + PAD]
    # when 0 <= i - w + PAD < K, else 0 (implicit zero padding along W).
    col = jnp.arange(W)
    kx_idx = col[:, None] - col[None, :] + PAD            # (W, W)
    valid = ((kx_idx >= 0) & (kx_idx < K)).astype(jnp.float32)
    band = wf[:, :, jnp.clip(kx_idx, 0, K - 1)] * valid[None, None]  # (2,K,W,W)
    band = band.at[0].multiply(1.0 / C)           # fold the channel-mean divide

    # Row-shift matrices: rsel[ky, h, j] = 1 iff j == h + ky - PAD (else 0),
    # giving implicit zero padding along H.
    row = jnp.arange(H)
    rsel = (row[None, None, :] ==
            (row[None, :, None] + jnp.arange(K)[:, None, None] - PAD)
            ).astype(jnp.float32)                 # (K, H, H)

    # Channel chunk: keep the double-buffered input block <= ~8 MiB (scoped
    # VMEM headroom on v5e / v7x) and cap the per-step f32 widened copy.
    if c_chunk is None:
        per_chan = H * W * x.dtype.itemsize
        c_chunk = int(max(1, min(C, 512,
                                 (8 * 1024 * 1024) // (2 * per_chan))))
    n_chunks = pl.cdiv(C, c_chunk)

    kernel = functools.partial(_spatial_attn_kernel,
                               c_total=C, c_chunk=c_chunk)
    return pl.pallas_call(
        kernel,
        out_shape=jax.ShapeDtypeStruct((N, 1, H, W), x.dtype),
        grid_spec=pltpu.PrefetchScalarGridSpec(
            num_scalar_prefetch=0,
            grid=(N, n_chunks),
            in_specs=[
                pl.BlockSpec((2, K, W, W), lambda n, c: (0, 0, 0, 0)),
                pl.BlockSpec((K, H, H), lambda n, c: (0, 0, 0)),
                pl.BlockSpec(memory_space=pltpu.MemorySpace.SMEM),    # bias
                pl.BlockSpec((1, c_chunk, H, W), lambda n, c: (n, c, 0, 0)),
            ],
            out_specs=pl.BlockSpec((1, 1, H, W), lambda n, c: (n, 0, 0, 0)),
            scratch_shapes=[pltpu.VMEM((H, W), jnp.float32),
                            pltpu.VMEM((H, W), jnp.float32)],
        ),
        compiler_params=pltpu.CompilerParams(
            dimension_semantics=("parallel", "arbitrary")),
    )(band, rsel, bf, x)


def _reference(x, weight, bias):
    avg = jnp.mean(x, axis=1, keepdims=True)
    mx = jnp.max(x, axis=1, keepdims=True)
    cat = jnp.concatenate([avg, mx], axis=1)
    out = lax.conv_general_dilated(
        cat, weight, window_strides=(1, 1), padding=((PAD, PAD), (PAD, PAD)),
        dimension_numbers=("NCHW", "OIHW", "NCHW"))
    return jax.nn.sigmoid(out + bias.reshape(1, 1, 1, 1))


if __name__ == "__main__":
    key = jax.random.PRNGKey(0)
    k_x, k_w, k_b = jax.random.split(key, 3)

    N, C, H, W = 2, 4, 16, 16
    x = jax.random.normal(k_x, (N, C, H, W), dtype=jnp.float32)
    # Deterministic synthetic conv parameters (nn.Conv2d(2, 1, 7, padding=3)).
    weight = 0.1 * jax.random.normal(k_w, (1, 2, K, K), dtype=jnp.float32)
    bias = 0.1 * jax.random.normal(k_b, (1,), dtype=jnp.float32)

    out = spatial_attention(x, weight, bias)
    out = jax.block_until_ready(out)

    ref = _reference(x, weight, bias)
    assert out.shape == (N, 1, H, W)
    assert jnp.allclose(out, ref, atol=1e-5, rtol=1e-5), "mismatch vs reference"

    print("KERNEL_OK")
</pallas_src>

<mosaic_0001>
module attributes {stable_mosaic.version = 11 : i64} {
  func.func @_spatial_attn_kernel(%arg0: i32, %arg1: i32, %arg2: memref<2x7x16x16xf32, #tpu.memory_space<vmem>>, %arg3: memref<7x16x16xf32, #tpu.memory_space<vmem>>, %arg4: memref<1xf32, #tpu.memory_space<smem>>, %arg5: memref<1x4x16x16xf32, #tpu.memory_space<vmem>>, %arg6: memref<1x1x16x16xf32, #tpu.memory_space<vmem>>, %arg7: memref<16x16xf32, #tpu.memory_space<vmem>>, %arg8: memref<16x16xf32, #tpu.memory_space<vmem>>) attributes {dimension_semantics = [#tpu.dimension_semantics<parallel>, #tpu.dimension_semantics<arbitrary>], iteration_bounds = array<i64: 2, 1>, scalar_prefetch = 0 : i64, scratch_operands = 2 : i64, tpu.core_type = #tpu.core_type<tc>, window_params = [{pipeline_mode = #tpu.pipeline_mode<synchronous>, transform_indices = @transform_0, window_bounds = array<i64: 2, 7, 16, 16>}, {pipeline_mode = #tpu.pipeline_mode<synchronous>, transform_indices = @transform_1, window_bounds = array<i64: 7, 16, 16>}, {transform_indices = @transform_2, window_bounds = array<i64: 1>}, {transform_indices = @transform_3, window_bounds = array<i64: 1, 4, 16, 16>}, {transform_indices = @transform_4, window_bounds = array<i64: 1, 1, 16, 16>}]} {
    %c0_i32 = arith.constant 0 : i32
    %0 = arith.cmpi eq, %arg1, %c0_i32 : i32
    %1 = arith.extui %0 : i1 to i32
    %c0_i32_0 = arith.constant 0 : i32
    %2 = arith.cmpi ne, %1, %c0_i32_0 : i32
    scf.if %2 {
      %cst_15 = arith.constant 0.000000e+00 : f32
      %16 = vector.broadcast %cst_15 : f32 to vector<16x16xf32>
      %c0_16 = arith.constant 0 : index
      %c0_17 = arith.constant 0 : index
      %17 = vector.load %arg7[%c0_16, %c0_17] : memref<16x16xf32, #tpu.memory_space<vmem>>, vector<16x16xf32>
      tpu.vector_store %arg7[%c0_16, %c0_17], %16 {strides = array<i32>} : memref<16x16xf32, #tpu.memory_space<vmem>>, vector<16x16xf32>,
      %cst_18 = arith.constant 0xFF800000 : f32
      %18 = vector.broadcast %cst_18 : f32 to vector<16x16xf32>
      %c0_19 = arith.constant 0 : index
      %c0_20 = arith.constant 0 : index
      %19 = vector.load %arg8[%c0_19, %c0_20] : memref<16x16xf32, #tpu.memory_space<vmem>>, vector<16x16xf32>
      tpu.vector_store %arg8[%c0_19, %c0_20], %18 {strides = array<i32>} : memref<16x16xf32, #tpu.memory_space<vmem>>, vector<16x16xf32>,
    } else {
    }
    %c0 = arith.constant 0 : index
    %c0_1 = arith.constant 0 : index
    %c0_2 = arith.constant 0 : index
    %c0_3 = arith.constant 0 : index
    %3 = vector.load %arg5[%c0, %c0_1, %c0_2, %c0_3] : memref<1x4x16x16xf32, #tpu.memory_space<vmem>>, vector<1x4x16x16xf32>
    %4 = vector.shape_cast %3 : vector<1x4x16x16xf32> to vector<4x16x16xf32>
    %cst = arith.constant dense<0.000000e+00> : vector<16x16xf32>
    %5 = vector.multi_reduction <add>, %4, %cst [0] : vector<4x16x16xf32> to vector<16x16xf32>
    %cst_4 = arith.constant dense<0xFF800000> : vector<16x16xf32>
    %6 = vector.multi_reduction <maximumf>, %4, %cst_4 [0] : vector<4x16x16xf32> to vector<16x16xf32>
    %c0_5 = arith.constant 0 : index
    %c0_6 = arith.constant 0 : index
    %7 = vector.load %arg7[%c0_5, %c0_6] : memref<16x16xf32, #tpu.memory_space<vmem>>, vector<16x16xf32>
    %8 = arith.addf %7, %5 : vector<16x16xf32>
    %c0_7 = arith.constant 0 : index
    %c0_8 = arith.constant 0 : index
    %9 = vector.load %arg7[%c0_7, %c0_8] : memref<16x16xf32, #tpu.memory_space<vmem>>, vector<16x16xf32>
    tpu.vector_store %arg7[%c0_7, %c0_8], %8 {strides = array<i32>} : memref<16x16xf32, #tpu.memory_space<vmem>>, vector<16x16xf32>,
    %c0_9 = arith.constant 0 : index
    %c0_10 = arith.constant 0 : index
    %10 = vector.load %arg8[%c0_9, %c0_10] : memref<16x16xf32, #tpu.memory_space<vmem>>, vector<16x16xf32>
    %11 = arith.maximumf %10, %6 : vector<16x16xf32>
    %c0_11 = arith.constant 0 : index
    %c0_12 = arith.constant 0 : index
    %12 = vector.load %arg8[%c0_11, %c0_12] : memref<16x16xf32, #tpu.memory_space<vmem>>, vector<16x16xf32>
    tpu.vector_store %arg8[%c0_11, %c0_12], %11 {strides = array<i32>} : memref<16x16xf32, #tpu.memory_space<vmem>>, vector<16x16xf32>,
    %c0_i32_13 = arith.constant 0 : i32
    %13 = arith.cmpi eq, %arg1, %c0_i32_13 : i32
    %14 = arith.extui %13 : i1 to i32
    %c0_i32_14 = arith.constant 0 : i32
    %15 = arith.cmpi ne, %14, %c0_i32_14 : i32
    scf.if %15 {
      %c0_15 = arith.constant 0 : index
      %c0_16 = arith.constant 0 : index
      %16 = vector.load %arg7[%c0_15, %c0_16] : memref<16x16xf32, #tpu.memory_space<vmem>>, vector<16x16xf32>
      %c0_17 = arith.constant 0 : index
      %c0_18 = arith.constant 0 : index
      %17 = vector.load %arg8[%c0_17, %c0_18] : memref<16x16xf32, #tpu.memory_space<vmem>>, vector<16x16xf32>
      %c0_19 = arith.constant 0 : index
      %18 = memref.load %arg4[%c0_19] : memref<1xf32, #tpu.memory_space<smem>>
      %19 = vector.broadcast %18 : f32 to vector<16x16xf32>
      %c0_20 = arith.constant 0 : index
      %c0_21 = arith.constant 0 : index
      %c0_22 = arith.constant 0 : index
      %c0_23 = arith.constant 0 : index
      %20 = vector.load %arg2[%c0_20, %c0_21, %c0_22, %c0_23] : memref<2x7x16x16xf32, #tpu.memory_space<vmem>>, vector<1x1x16x16xf32>
      %21 = vector.shape_cast %20 : vector<1x1x16x16xf32> to vector<16x16xf32>
      %cst_24 = arith.constant dense<0.000000e+00> : vector<16x16xf32>
      %22 = tpu.matmul %16, %21, %cst_24 {dimension_numbers = #tpu.dot_dimension_numbers<[1], [0], [0], [1], [0, 0, 1, 1], [], []>} : vector<16x16xf32>, vector<16x16xf32>, vector<16x16xf32> -> vector<16x16xf32>
      %c1 = arith.constant 1 : index
      %c0_25 = arith.constant 0 : index
      %c0_26 = arith.constant 0 : index
      %c0_27 = arith.constant 0 : index
      %23 = vector.load %arg2[%c1, %c0_25, %c0_26, %c0_27] : memref<2x7x16x16xf32, #tpu.memory_space<vmem>>, vector<1x1x16x16xf32>
      %24 = vector.shape_cast %23 : vector<1x1x16x16xf32> to vector<16x16xf32>
      %cst_28 = arith.constant dense<0.000000e+00> : vector<16x16xf32>
      %25 = tpu.matmul %17, %24, %cst_28 {dimension_numbers = #tpu.dot_dimension_numbers<[1], [0], [0], [1], [0, 0, 1, 1], [], []>} : vector<16x16xf32>, vector<16x16xf32>, vector<16x16xf32> -> vector<16x16xf32>
      %26 = arith.addf %22, %25 : vector<16x16xf32>
      %c0_29 = arith.constant 0 : index
      %c0_30 = arith.constant 0 : index
      %c0_31 = arith.constant 0 : index
      %27 = vector.load %arg3[%c0_29, %c0_30, %c0_31] : memref<7x16x16xf32, #tpu.memory_space<vmem>>, vector<1x16x16xf32>
      %28 = vector.shape_cast %27 : vector<1x16x16xf32> to vector<16x16xf32>
      %cst_32 = arith.constant dense<0.000000e+00> : vector<16x16xf32>
      %29 = tpu.matmul %28, %26, %cst_32 {dimension_numbers = #tpu.dot_dimension_numbers<[1], [0], [0], [1], [0, 0, 1, 1], [], []>} : vector<16x16xf32>, vector<16x16xf32>, vector<16x16xf32> -> vector<16x16xf32>
      %30 = arith.addf %19, %29 : vector<16x16xf32>
      %c0_33 = arith.constant 0 : index
      %c1_34 = arith.constant 1 : index
      %c0_35 = arith.constant 0 : index
      %c0_36 = arith.constant 0 : index
      %31 = vector.load %arg2[%c0_33, %c1_34, %c0_35, %c0_36] : memref<2x7x16x16xf32, #tpu.memory_space<vmem>>, vector<1x1x16x16xf32>
      %32 = vector.shape_cast %31 : vector<1x1x16x16xf32> to vector<16x16xf32>
      %cst_37 = arith.constant dense<0.000000e+00> : vector<16x16xf32>
      %33 = tpu.matmul %16, %32, %cst_37 {dimension_numbers = #tpu.dot_dimension_numbers<[1], [0], [0], [1], [0, 0, 1, 1], [], []>} : vector<16x16xf32>, vector<16x16xf32>, vector<16x16xf32> -> vector<16x16xf32>
      %c1_38 = arith.constant 1 : index
      %c1_39 = arith.constant 1 : index
      %c0_40 = arith.constant 0 : index
      %c0_41 = arith.constant 0 : index
      %34 = vector.load %arg2[%c1_38, %c1_39, %c0_40, %c0_41] : memref<2x7x16x16xf32, #tpu.memory_space<vmem>>, vector<1x1x16x16xf32>
      %35 = vector.shape_cast %34 : vector<1x1x16x16xf32> to vector<16x16xf32>
      %cst_42 = arith.constant dense<0.000000e+00> : vector<16x16xf32>
      %36 = tpu.matmul %17, %35, %cst_42 {dimension_numbers = #tpu.dot_dimension_numbers<[1], [0], [0], [1], [0, 0, 1, 1], [], []>} : vector<16x16xf32>, vector<16x16xf32>, vector<16x16xf32> -> vector<16x16xf32>
      %37 = arith.addf %33, %36 : vector<16x16xf32>
      %c1_43 = arith.constant 1 : index
      %c0_44 = arith.constant 0 : index
      %c0_45 = arith.constant 0 : index
      %38 = vector.load %arg3[%c1_43, %c0_44, %c0_45] : memref<7x16x16xf32, #tpu.memory_space<vmem>>, vector<1x16x16xf32>
      %39 = vector.shape_cast %38 : vector<1x16x16xf32> to vector<16x16xf32>
      %cst_46 = arith.constant dense<0.000000e+00> : vector<16x16xf32>
      %40 = tpu.matmul %39, %37, %cst_46 {dimension_numbers = #tpu.dot_dimension_numbers<[1], [0], [0], [1], [0, 0, 1, 1], [], []>} : vector<16x16xf32>, vector<16x16xf32>, vector<16x16xf32> -> vector<16x16xf32>
      %41 = arith.addf %30, %40 : vector<16x16xf32>
      %c0_47 = arith.constant 0 : index
      %c2 = arith.constant 2 : index
      %c0_48 = arith.constant 0 : index
      %c0_49 = arith.constant 0 : index
      %42 = vector.load %arg2[%c0_47, %c2, %c0_48, %c0_49] : memref<2x7x16x16xf32, #tpu.memory_space<vmem>>, vector<1x1x16x16xf32>
      %43 = vector.shape_cast %42 : vector<1x1x16x16xf32> to vector<16x16xf32>
      %cst_50 = arith.constant dense<0.000000e+00> : vector<16x16xf32>
      %44 = tpu.matmul %16, %43, %cst_50 {dimension_numbers = #tpu.dot_dimension_numbers<[1], [0], [0], [1], [0, 0, 1, 1], [], []>} : vector<16x16xf32>, vector<16x16xf32>, vector<16x16xf32> -> vector<16x16xf32>
      %c1_51 = arith.constant 1 : index
      %c2_52 = arith.constant 2 : index
      %c0_53 = arith.constant 0 : index
      %c0_54 = arith.constant 0 : index
      %45 = vector.load %arg2[%c1_51, %c2_52, %c0_53, %c0_54] : memref<2x7x16x16xf32, #tpu.memory_space<vmem>>, vector<1x1x16x16xf32>
      %46 = vector.shape_cast %45 : vector<1x1x16x16xf32> to vector<16x16xf32>
      %cst_55 = arith.constant dense<0.000000e+00> : vector<16x16xf32>
      %47 = tpu.matmul %17, %46, %cst_55 {dimension_numbers = #tpu.dot_dimension_numbers<[1], [0], [0], [1], [0, 0, 1, 1], [], []>} : vector<16x16xf32>, vector<16x16xf32>, vector<16x16xf32> -> vector<16x16xf32>
      %48 = arith.addf %44, %47 : vector<16x16xf32>
      %c2_56 = arith.constant 2 : index
      %c0_57 = arith.constant 0 : index
      %c0_58 = arith.constant 0 : index
      %49 = vector.load %arg3[%c2_56, %c0_57, %c0_58] : memref<7x16x16xf32, #tpu.memory_space<vmem>>, vector<1x16x16xf32>
      %50 = vector.shape_cast %49 : vector<1x16x16xf32> to vector<16x16xf32>
      %cst_59 = arith.constant dense<0.000000e+00> : vector<16x16xf32>
      %51 = tpu.matmul %50, %48, %cst_59 {dimension_numbers = #tpu.dot_dimension_numbers<[1], [0], [0], [1], [0, 0, 1, 1], [], []>} : vector<16x16xf32>, vector<16x16xf32>, vector<16x16xf32> -> vector<16x16xf32>
      %52 = arith.addf %41, %51 : vector<16x16xf32>
      %c0_60 = arith.constant 0 : index
      %c3 = arith.constant 3 : index
      %c0_61 = arith.constant 0 : index
      %c0_62 = arith.constant 0 : index
      %53 = vector.load %arg2[%c0_60, %c3, %c0_61, %c0_62] : memref<2x7x16x16xf32, #tpu.memory_space<vmem>>, vector<1x1x16x16xf32>
      %54 = vector.shape_cast %53 : vector<1x1x16x16xf32> to vector<16x16xf32>
      %cst_63 = arith.constant dense<0.000000e+00> : vector<16x16xf32>
      %55 = tpu.matmul %16, %54, %cst_63 {dimension_numbers = #tpu.dot_dimension_numbers<[1], [0], [0], [1], [0, 0, 1, 1], [], []>} : vector<16x16xf32>, vector<16x16xf32>, vector<16x16xf32> -> vector<16x16xf32>
      %c1_64 = arith.constant 1 : index
      %c3_65 = arith.constant 3 : index
      %c0_66 = arith.constant 0 : index
      %c0_67 = arith.constant 0 : index
      %56 = vector.load %arg2[%c1_64, %c3_65, %c0_66, %c0_67] : memref<2x7x16x16xf32, #tpu.memory_space<vmem>>, vector<1x1x16x16xf32>
      %57 = vector.shape_cast %56 : vector<1x1x16x16xf32> to vector<16x16xf32>
      %cst_68 = arith.constant dense<0.000000e+00> : vector<16x16xf32>
      %58 = tpu.matmul %17, %57, %cst_68 {dimension_numbers = #tpu.dot_dimension_numbers<[1], [0], [0], [1], [0, 0, 1, 1], [], []>} : vector<16x16xf32>, vector<16x16xf32>, vector<16x16xf32> -> vector<16x16xf32>
      %59 = arith.addf %55, %58 : vector<16x16xf32>
      %c3_69 = arith.constant 3 : index
      %c0_70 = arith.constant 0 : index
      %c0_71 = arith.constant 0 : index
      %60 = vector.load %arg3[%c3_69, %c0_70, %c0_71] : memref<7x16x16xf32, #tpu.memory_space<vmem>>, vector<1x16x16xf32>
      %61 = vector.shape_cast %60 : vector<1x16x16xf32> to vector<16x16xf32>
      %cst_72 = arith.constant dense<0.000000e+00> : vector<16x16xf32>
      %62 = tpu.matmul %61, %59, %cst_72 {dimension_numbers = #tpu.dot_dimension_numbers<[1], [0], [0], [1], [0, 0, 1, 1], [], []>} : vector<16x16xf32>, vector<16x16xf32>, vector<16x16xf32> -> vector<16x16xf32>
      %63 = arith.addf %52, %62 : vector<16x16xf32>
      %c0_73 = arith.constant 0 : index
      %c4 = arith.constant 4 : index
      %c0_74 = arith.constant 0 : index
      %c0_75 = arith.constant 0 : index
      %64 = vector.load %arg2[%c0_73, %c4, %c0_74, %c0_75] : memref<2x7x16x16xf32, #tpu.memory_space<vmem>>, vector<1x1x16x16xf32>
      %65 = vector.shape_cast %64 : vector<1x1x16x16xf32> to vector<16x16xf32>
      %cst_76 = arith.constant dense<0.000000e+00> : vector<16x16xf32>
      %66 = tpu.matmul %16, %65, %cst_76 {dimension_numbers = #tpu.dot_dimension_numbers<[1], [0], [0], [1], [0, 0, 1, 1], [], []>} : vector<16x16xf32>, vector<16x16xf32>, vector<16x16xf32> -> vector<16x16xf32>
      %c1_77 = arith.constant 1 : index
      %c4_78 = arith.constant 4 : index
      %c0_79 = arith.constant 0 : index
      %c0_80 = arith.constant 0 : index
      %67 = vector.load %arg2[%c1_77, %c4_78, %c0_79, %c0_80] : memref<2x7x16x16xf32, #tpu.memory_space<vmem>>, vector<1x1x16x16xf32>
      %68 = vector.shape_cast %67 : vector<1x1x16x16xf32> to vector<16x16xf32>
      %cst_81 = arith.constant dense<0.000000e+00> : vector<16x16xf32>
      %69 = tpu.matmul %17, %68, %cst_81 {dimension_numbers = #tpu.dot_dimension_numbers<[1], [0], [0], [1], [0, 0, 1, 1], [], []>} : vector<16x16xf32>, vector<16x16xf32>, vector<16x16xf32> -> vector<16x16xf32>
      %70 = arith.addf %66, %69 : vector<16x16xf32>
      %c4_82 = arith.constant 4 : index
      %c0_83 = arith.constant 0 : index
      %c0_84 = arith.constant 0 : index
      %71 = vector.load %arg3[%c4_82, %c0_83, %c0_84] : memref<7x16x16xf32, #tpu.memory_space<vmem>>, vector<1x16x16xf32>
      %72 = vector.shape_cast %71 : vector<1x16x16xf32> to vector<16x16xf32>
      %cst_85 = arith.constant dense<0.000000e+00> : vector<16x16xf32>
      %73 = tpu.matmul %72, %70, %cst_85 {dimension_numbers = #tpu.dot_dimension_numbers<[1], [0], [0], [1], [0, 0, 1, 1], [], []>} : vector<16x16xf32>, vector<16x16xf32>, vector<16x16xf32> -> vector<16x16xf32>
      %74 = arith.addf %63, %73 : vector<16x16xf32>
      %c0_86 = arith.constant 0 : index
      %c5 = arith.constant 5 : index
      %c0_87 = arith.constant 0 : index
      %c0_88 = arith.constant 0 : index
      %75 = vector.load %arg2[%c0_86, %c5, %c0_87, %c0_88] : memref<2x7x16x16xf32, #tpu.memory_space<vmem>>, vector<1x1x16x16xf32>
      %76 = vector.shape_cast %75 : vector<1x1x16x16xf32> to vector<16x16xf32>
      %cst_89 = arith.constant dense<0.000000e+00> : vector<16x16xf32>
      %77 = tpu.matmul %16, %76, %cst_89 {dimension_numbers = #tpu.dot_dimension_numbers<[1], [0], [0], [1], [0, 0, 1, 1], [], []>} : vector<16x16xf32>, vector<16x16xf32>, vector<16x16xf32> -> vector<16x16xf32>
      %c1_90 = arith.constant 1 : index
      %c5_91 = arith.constant 5 : index
      %c0_92 = arith.constant 0 : index
      %c0_93 = arith.constant 0 : index
      %78 = vector.load %arg2[%c1_90, %c5_91, %c0_92, %c0_93] : memref<2x7x16x16xf32, #tpu.memory_space<vmem>>, vector<1x1x16x16xf32>
      %79 = vector.shape_cast %78 : vector<1x1x16x16xf32> to vector<16x16xf32>
      %cst_94 = arith.constant dense<0.000000e+00> : vector<16x16xf32>
      %80 = tpu.matmul %17, %79, %cst_94 {dimension_numbers = #tpu.dot_dimension_numbers<[1], [0], [0], [1], [0, 0, 1, 1], [], []>} : vector<16x16xf32>, vector<16x16xf32>, vector<16x16xf32> -> vector<16x16xf32>
      %81 = arith.addf %77, %80 : vector<16x16xf32>
      %c5_95 = arith.constant 5 : index
      %c0_96 = arith.constant 0 : index
      %c0_97 = arith.constant 0 : index
      %82 = vector.load %arg3[%c5_95, %c0_96, %c0_97] : memref<7x16x16xf32, #tpu.memory_space<vmem>>, vector<1x16x16xf32>
      %83 = vector.shape_cast %82 : vector<1x16x16xf32> to vector<16x16xf32>
      %cst_98 = arith.constant dense<0.000000e+00> : vector<16x16xf32>
      %84 = tpu.matmul %83, %81, %cst_98 {dimension_numbers = #tpu.dot_dimension_numbers<[1], [0], [0], [1], [0, 0, 1, 1], [], []>} : vector<16x16xf32>, vector<16x16xf32>, vector<16x16xf32> -> vector<16x16xf32>
      %85 = arith.addf %74, %84 : vector<16x16xf32>
      %c0_99 = arith.constant 0 : index
      %c6 = arith.constant 6 : index
      %c0_100 = arith.constant 0 : index
      %c0_101 = arith.constant 0 : index
      %86 = vector.load %arg2[%c0_99, %c6, %c0_100, %c0_101] : memref<2x7x16x16xf32, #tpu.memory_space<vmem>>, vector<1x1x16x16xf32>
      %87 = vector.shape_cast %86 : vector<1x1x16x16xf32> to vector<16x16xf32>
      %cst_102 = arith.constant dense<0.000000e+00> : vector<16x16xf32>
      %88 = tpu.matmul %16, %87, %cst_102 {dimension_numbers = #tpu.dot_dimension_numbers<[1], [0], [0], [1], [0, 0, 1, 1], [], []>} : vector<16x16xf32>, vector<16x16xf32>, vector<16x16xf32> -> vector<16x16xf32>
      %c1_103 = arith.constant 1 : index
      %c6_104 = arith.constant 6 : index
      %c0_105 = arith.constant 0 : index
      %c0_106 = arith.constant 0 : index
      %89 = vector.load %arg2[%c1_103, %c6_104, %c0_105, %c0_106] : memref<2x7x16x16xf32, #tpu.memory_space<vmem>>, vector<1x1x16x16xf32>
      %90 = vector.shape_cast %89 : vector<1x1x16x16xf32> to vector<16x16xf32>
      %cst_107 = arith.constant dense<0.000000e+00> : vector<16x16xf32>
      %91 = tpu.matmul %17, %90, %cst_107 {dimension_numbers = #tpu.dot_dimension_numbers<[1], [0], [0], [1], [0, 0, 1, 1], [], []>} : vector<16x16xf32>, vector<16x16xf32>, vector<16x16xf32> -> vector<16x16xf32>
      %92 = arith.addf %88, %91 : vector<16x16xf32>
      %c6_108 = arith.constant 6 : index
      %c0_109 = arith.constant 0 : index
      %c0_110 = arith.constant 0 : index
      %93 = vector.load %arg3[%c6_108, %c0_109, %c0_110] : memref<7x16x16xf32, #tpu.memory_space<vmem>>, vector<1x16x16xf32>
      %94 = vector.shape_cast %93 : vector<1x16x16xf32> to vector<16x16xf32>
      %cst_111 = arith.constant dense<0.000000e+00> : vector<16x16xf32>
      %95 = tpu.matmul %94, %92, %cst_111 {dimension_numbers = #tpu.dot_dimension_numbers<[1], [0], [0], [1], [0, 0, 1, 1], [], []>} : vector<16x16xf32>, vector<16x16xf32>, vector<16x16xf32> -> vector<16x16xf32>
      %96 = arith.addf %85, %95 : vector<16x16xf32>
      %97 = arith.negf %96 : vector<16x16xf32>
      %98 = math.exp %97 : vector<16x16xf32>
      %cst_112 = arith.constant 1.000000e+00 : f32
      %99 = vector.broadcast %cst_112 : f32 to vector<16x16xf32>
      %100 = arith.addf %99, %98 : vector<16x16xf32>
      %101 = arith.divf %99, %100 : vector<16x16xf32>
      %c0_113 = arith.constant 0 : index
      %c0_114 = arith.constant 0 : index
      %c0_115 = arith.constant 0 : index
      %c0_116 = arith.constant 0 : index
      %102 = vector.load %arg6[%c0_113, %c0_114, %c0_115, %c0_116] : memref<1x1x16x16xf32, #tpu.memory_space<vmem>>, vector<1x1x16x16xf32>
      %103 = vector.shape_cast %102 : vector<1x1x16x16xf32> to vector<16x16xf32>
      %104 = vector.shape_cast %101 : vector<16x16xf32> to vector<1x1x16x16xf32>
      tpu.vector_store %arg6[%c0_113, %c0_114, %c0_115, %c0_116], %104 {strides = array<i32>} : memref<1x1x16x16xf32, #tpu.memory_space<vmem>>, vector<1x1x16x16xf32>,
    } else {
    }
    return
  }
  func.func @transform_0(%arg0: i32, %arg1: i32) -> (i32, i32, i32, i32) {
    %c0_i32 = arith.constant 0 : i32
    %c0_i32_0 = arith.constant 0 : i32
    %c0_i32_1 = arith.constant 0 : i32
    %c0_i32_2 = arith.constant 0 : i32
    %c0_i32_3 = arith.constant 0 : i32
    return %c0_i32, %c0_i32_0, %c0_i32_1, %c0_i32_2 : i32, i32, i32, i32
  }
  func.func @transform_1(%arg0: i32, %arg1: i32) -> (i32, i32, i32) {
    %c0_i32 = arith.constant 0 : i32
    %c0_i32_0 = arith.constant 0 : i32
    %c0_i32_1 = arith.constant 0 : i32
    %c0_i32_2 = arith.constant 0 : i32
    return %c0_i32, %c0_i32_0, %c0_i32_1 : i32, i32, i32
  }
  func.func @transform_2(%arg0: i32, %arg1: i32) -> i32 {
    %c0_i32 = arith.constant 0 : i32
    %c0_i32_0 = arith.constant 0 : i32
    return %c0_i32 : i32
  }
  func.func @transform_3(%arg0: i32, %arg1: i32) -> (i32, i32, i32, i32) {
    %c0_i32 = arith.constant 0 : i32
    %c0_i32_0 = arith.constant 0 : i32
    %c0_i32_1 = arith.constant 0 : i32
    return %arg0, %arg1, %c0_i32, %c0_i32_0 : i32, i32, i32, i32
  }
  func.func @transform_4(%arg0: i32, %arg1: i32) -> (i32, i32, i32, i32) {
    %c0_i32 = arith.constant 0 : i32
    %c0_i32_0 = arith.constant 0 : i32
    %c0_i32_1 = arith.constant 0 : i32
    %c0_i32_2 = arith.constant 0 : i32
    return %arg0, %c0_i32, %c0_i32_0, %c0_i32_1 : i32, i32, i32, i32
  }
}

</mosaic_0001>

<bundles_post_ra>
// kernel: tpu_custom_call.1
= control target key start
LH: loop header
LB: loop body
LE: loop exit
PB: predicated region body
PF: predicated region fallthrough
CT: control target
= control target key end

     0   :  { %s3070_s0 = inlined_call_operand.hbm [shape: f32[2,7,16,16], index: 0, kind: input, shape index: {}]   ;;  %s3071_s1 = inlined_call_operand.hbm [shape: f32[7,16,16], index: 1, kind: input, shape index: {}]   ;;  %s3072_s2 = inlined_call_operand.<no memory space> [shape: f32[1], index: 2, kind: input, shape index: {}]   ;;  %s3073_s3 = inlined_call_operand.hbm [shape: f32[2,4,16,16], index: 3, kind: input, shape index: {}]   ;;  %s3074_s4 = inlined_call_operand.hbm [shape: f32[2,1,16,16], index: 4, kind: output, shape index: {}]  }
   0x1   :  { %3079 = sst [smem:[#allocation16_spill]] %s3070_s0 }
   0x2   :  { %3080 = sst [smem:[#allocation17_spill]] %s3071_s1 }
   0x3   :  { %9 = sst [smem:[#allocation4]] %s3072_s2 }
   0x4   :  { %10 = vsyncpa [#allocation6], 0 }
   0x5   :  { %11 = vsyncpa [#allocation9], 0 }
   0x6   :  { %12 = vsyncpa [#allocation7], 0 }
   0x7   :  { %14 = vsyncpa [#allocation7 + $0x1], 0  ;;  %s2765_s17 = smov 0   ;;  %s2767_s18 = smov 0  }
   0x8   :  { %s2769_s19 = smov 0   ;;  %s2771_s20 = smov 0  }
   0x9   :  { %s2773_s21 = smov 0   ;;  %s2775_s22 = smov 0  }
   0xa LB: > { %s2796_s2 = sadd.s32 4294967295, %s2725_s22   ;;  %s2165_s23 = sadd.s32 4294967294, %s2725_s22   ;;  %s2725_s22 = sphi %s2775_s22, %s20_s22   ;;  %s2721_s21 = sphi %s2773_s21, %s3103_s21   ;;  %s2717_s20 = sphi %s2771_s20, %s3102_s20   ;;  %s2713_s19 = sphi %s2769_s19, %s3101_s19   ;;  %s2709_s18 = sphi %s2767_s18, %s3100_s18   ;;  %s2705_s17 = sphi %s2765_s17, %s3099_s17  }
   0xb   : > { %p111_p0 = scmp.ne.s32.totalorder %s2713_s19, %s2709_s18  ;;  %p112_p1 = scmp.eq.s32.totalorder %s2725_s22, 0 }
   0xc   : > { %p117_p2 = scmp.ne.s32.totalorder %s2709_s18, %s2705_s17  ;;  %p3075_p3 = scmp.eq.s32.totalorder %s2796_s2, 0 }
   0xd   : > { %p2805_p4 = por %p112_p1, %p111_p0  ;;  %p141_p5 = scmp.eq.s32.totalorder %s2796_s2, 1 }
   0xe   : > { %p2812_p6 = por %p3075_p3, %p117_p2  ;;  %p147_p7 = scmp.eq.s32.totalorder %s2165_s23, 1 }
   0xf   : > { %p2816_p8 = por %p141_p5, %p111_p0  ;;  %p2166_p9 = scmp.ge.s32.totalorder %s2725_s22, 1 }
  0x10   : > { %p2821_p10 = por %p147_p7, %p117_p2  ;;  %p154_p11 = scmp.lt.s32.totalorder %s2725_s22, 3 }
  0x11   : > { %s3083_s26 = scalar_select %p2816_p8, 1, 0 }
  0x12   : > { %s3084_s27 = scalar_select %p2821_p10, 1, 0 }
  0x13   : > { %p2826_p12 = pnand %p2166_p9, %p154_p11  ;;  %s2727_s29 = smov [#allocation5]  }
  0x14   : > { %s166_s30 = sshll.u32 %s2727_s29, 4  ;;  %p2489_p1 = scmp.lt.s32.totalorder %s2725_s22, 2  ;;  %s167_s30 = int_to_ptr.vmem [resolvable:$true] %s166_s30 }
  0x15   : > { %p2472_p13 = pneg %p2826_p12  ;;  %s2728_s7 = smov [#allocation8]  }
  0x16   : > { %p2842_p2 = pnand %p2489_p1, %p2805_p4  ;;  %s179_s8 = sshll.u32 %s2728_s7, 4  ;;  %s180_s8 = int_to_ptr.vmem [resolvable:$true] %s179_s8 }
  0x17   : > { %p2836_p5 = pnand %p2472_p13, %p3075_p3  ;;  %s2568_s9 = scalar_lea.vmem %s167_s30, 3584 }
  0x18   : > { %p2569_p9 = scmp.ne.s32.totalorder %s167_s30, %s2568_s9  ;;  %p2576_p0 = scmp.lt.s32.totalorder %s167_s30, %s167_s30 }
  0x19   : > { %p2559_p7 = pneg %p2836_p5  ;;  %p2577_p3 = scmp.lt.s32.totalorder %s2568_s9, %s2568_s9 }
  0x1b   : > { %p2571_p11 = pnand %p2569_p9, %p2559_p7  ;;  %p2578_p10 = por %p2577_p3, %p2576_p0 }
  0x1d   : > { %p2572_p13 = pneg %p2571_p11 }
  0x1f   : > { %p2579_p8 = pnand %p2578_p10, %p2572_p13 }
  0x21   : > { %2582 = shalt.err (!%p2579_p8)
}
  0x22   : > { %s3077_s10 = smov 128   ;;  %s3078_s11 = smov 8  }
  0x23   : > { %s3088_s0 = sld [smem:[#allocation16_spill]]  ;;  %s2594_s14 = scalar_lea.vmem %s180_s8, 1792 }
  0x24   : > { %p2595_p4 = scmp.ne.s32.totalorder %s180_s8, %s2594_s14  ;;  %p2602_p10 = scmp.lt.s32.totalorder %s180_s8, %s180_s8 }
  0x25   : > { %p2603_p8 = scmp.lt.s32.totalorder %s2594_s14, %s2594_s14 }
  0x26   : > { %p2597_p1 = pnand %p2595_p4, %p2559_p7 }
  0x27   : > { %p2604_p0 = por %p2603_p8, %p2602_p10 }
  0x28   : > { %p2598_p3 = pneg %p2597_p1 }
  0x29   : > { %2475 = dma.hbm_to_vmem [thread:$0]  (!%p2836_p5), %s3088_s0, 3584, %s167_s30, [#allocation6], %s3077_s10, %s3077_s10, %s3078_s11  }
  0x2a   : > { %p2605_p9 = pnand %p2604_p0, %p2598_p3 }
  0x2c   : > { %2608 = shalt.err (!%p2605_p9)
}
  0x2d   : > { %s3089_s1 = sld [smem:[#allocation17_spill]]  ;;  %s104_s23 = sadd.s32 1, %s2713_s19 }
  0x2e   : > { %s32_s24 = sadd.s32 1, %s2721_s21  ;;  %s196_s29 = sand.u32 1, %s2725_s22  }
  0x2f   : > { %p34_p7 = scmp.ge.s32.totalorder %s32_s24, 2  ;;  %s198_s30 = sand.u32 1, %s2713_s19  }
  0x30   : > { %s2227_s5 = sshll.u32 %s2721_s21, 10  ;;  %s2170_s7 = sshll.u32 %s198_s30, 6 }
  0x31   : > { %s3105_s24 = smov (%p34_p7, %s32_s24), 0  ;;  %s209_s13 = scalar_lea.hbm %s3073_s3, %s2227_s5 }
  0x32   : > { %s99_s14 = ssub.s32 %s2721_s21, %s3105_s24  ;;  %s200_s15 = scalar_lea.vmem [#allocation10], %s2170_s7 }
  0x33   : > { %2478 = dma.hbm_to_vmem [thread:$0]  (!%p2836_p5), %s3089_s1, 1792, %s180_s8, [#allocation9], %s3077_s10, %s3077_s10, %s3078_s11  }
  0x34   : > { %p102_p11 = scmp.eq.s32.totalorder %s99_s14, 0  ;;  %s210_s16 = sshll.u32 %s200_s15, 4  ;;  %s211_s16 = int_to_ptr.vmem [resolvable:$true] %s210_s16 }
  0x35   : > { %s197_s10 = scalar_lea.sflag [#allocation6], %s196_s29  ;;  %p2611_p5 = pneg %p2842_p2 }
  0x36   : > { %s2883_s8 = scalar_select %p102_p11, %s2713_s19, %s104_s23  }
  0x37   : > { %s2622_s11 = scalar_lea.vmem %s211_s16, 1024  ;;  %s2731_s0 = smov [#allocation10]  }
  0x38   : > { %p2623_p13 = scmp.ne.s32.totalorder %s211_s16, %s2622_s11  ;;  %s2627_s30 = sshll.u32 %s2731_s0, 4  ;;  %s2628_s30 = int_to_ptr.vmem [resolvable:$false] %s2627_s30 }
  0x39   : > { %s2629_s1 = scalar_lea.vmem %s2628_s30, 2048  ;;  %p2630_p3 = scmp.lt.s32.totalorder %s211_s16, %s2628_s30 }
  0x3a   : > { %p2625_p4 = pnand %p2623_p13, %p2611_p5  ;;  %p2631_p10 = scmp.lt.s32.totalorder %s2629_s1, %s2622_s11 }
  0x3c   : > { %p2626_p1 = pneg %p2625_p4  ;;  %p2632_p8 = por %p2631_p10, %p2630_p3 }
  0x3e   : > { %p2633_p0 = pnand %p2632_p8, %p2626_p1 }
  0x40   : > { %2636 = shalt.err (!%p2633_p0)
}
  0x41   : > { %s3090_s23 = smov 8   ;;  %s3091_s5 = smov 128  }
  0x42   : > { %2482 = dma.hbm_to_vmem [thread:$0]  (!%p2842_p2), %s209_s13, 1024, %s211_s16, %s197_s10, %s3091_s5, %s3091_s5, %s3090_s23  }
  0x43   : > { %222 = sbr.rel (%p2826_p12) target bundleno = 1765 (0x6e5), region = 36  ;;  %p3092_p9 = scmp.eq.s32.totalorder (!%p2826_p12), %s2796_s2, 0 }
  0x48   : > { %2688 = dma.done.wait (%p3092_p9), [#allocation6], 3584   ;;  %p3093_p7 = pmov %p3092_p9 }
  0x4a   : > { %2690 = vsyncadd (%p3093_p7), [#allocation6], 4294963712  ;;  %p3094_p11 = pmov %p3093_p7 }
  0x4b   : > { %p3095_p5 = pmov %p3093_p7 }
  0x4c   : > { %2692 = dma.done.wait (%p3094_p11), [#allocation9], 1792  }
  0x4d   : > { %2694 = vsyncadd (%p3095_p5), [#allocation9], 4294965504  ;;  %s232_s0 = sand.u32 1, %s2796_s2   ;;  %s2904_s1 = sand.u32 1, %s2709_s18  }
  0x4e   : > { %s2176_s28 = sshll.u32 %s2904_s1, 6  ;;  %s233_s6 = scalar_lea.sflag [#allocation6], %s232_s0 }
  0x4f   : > { %s236_s10 = scalar_lea.vmem [#allocation10], %s2176_s28 }
  0x50   : > { %2696 = dma.done.wait (%p2812_p6), %s233_s6, 1024  }
  0x51   : > { %2698 = vsyncadd (%p2812_p6), %s233_s6, 4294966272  ;;  %vm266_vm0 = vcmask 130048   ;;  %v2732_v0 = vmov -inf   ;;  %v2733_v1 = vmov 0.0   ;;  %v333_v2 = vld [vmem:[#allocation5 + $0x78] sm:$0xff]  ;;  %v332_v3 = vld [vmem:[#allocation5 + $0x70] sm:$0xff] }
  0x52   : > { %269 = vst.msk [vmem:[#allocation3] sm:$0xff] %vm266_vm0, %v2732_v0  ;;  %270 = vst.msk [vmem:[#allocation3 + $0x8] sm:$0xff] %vm266_vm0, %v2732_v0  ;;  %v330_v4 = vld [vmem:[#allocation5 + $0x8] sm:$0xff]  ;;  %2313 = vmatprep.subr.mxu0 %v333_v2  ;;  %v271_v5 = vld [vmem:[%s236_s10] sm:$0xff]  ;;  %s327_s2 = sld [smem:[#allocation4]]  ;;  %s2177_s25 = sshll.u32 %s2904_s1, 4 }
  0x53   : > { %267 = vst.msk [vmem:[#allocation2] sm:$0xff] %vm266_vm0, %v2733_v1  ;;  %268 = vst.msk [vmem:[#allocation2 + $0x8] sm:$0xff] %vm266_vm0, %v2733_v1  ;;  %2320 = vmatprep.subr.mxu1 %v330_v4  ;;  %v273_v6 = vld [vmem:[%s236_s10 + $0x10] sm:$0xff]  ;;  %v275_v7 = vld [vmem:[%s236_s10 + $0x20] sm:$0xff]  ;;  %2314 = vmatpush3.msra.mxu0 %v333_v2  ;;  %v294_v9 = vsel %vm266_vm0, %v271_v5, -inf  ;;  %v280_v19 = vsel %vm266_vm0, %v271_v5, 0.0 }
  0x54   : > { %v277_v8 = vld [vmem:[%s236_s10 + $0x30] sm:$0xff]  ;;  %v295_v10 = vsel %vm266_vm0, %v273_v6, -inf  ;;  %v296_v11 = vsel %vm266_vm0, %v275_v7, -inf  ;;  %2321 = vmatpush3.msra.mxu1 %v330_v4  ;;  %v272_v12 = vld [vmem:[%s236_s10 + $0x8] sm:$0xff]  ;;  %2315 = vmatprep.subr.mxu0 %v332_v3  ;;  %v274_v15 = vld [vmem:[%s236_s10 + $0x18] sm:$0xff]  ;;  %v281_v28 = vsel %vm266_vm0, %v273_v6, 0.0 }
  0x55   : > { %v297_v13 = vmax.f32 %v294_v9, %v296_v11  ;;  %v298_v14 = vsel %vm266_vm0, %v277_v8, -inf  ;;  %v276_v16 = vld [vmem:[%s236_s10 + $0x28] sm:$0xff]  ;;  %v278_v17 = vld [vmem:[%s236_s10 + $0x38] sm:$0xff]  ;;  %v301_v18 = vsel %vm266_vm0, %v272_v12, -inf  ;;  %2316 = vmatpush3.msra.mxu0 %v332_v3  ;;  %v302_v21 = vsel %vm266_vm0, %v274_v15, -inf  ;;  %v329_v24 = vld [vmem:[#allocation5] sm:$0xff] }
  0x56   : > { %v299_v20 = vmax.f32 %v295_v10, %v298_v14  ;;  %v303_v22 = vsel %vm266_vm0, %v276_v16, -inf  ;;  %v305_v23 = vsel %vm266_vm0, %v278_v17, -inf  ;;  %2322 = vmatprep.subr.mxu1 %v329_v24  ;;  %v283_v29 = vsel %vm266_vm0, %v275_v7, 0.0  ;;  %v586_v54 = vld [vmem:[#allocation5 + $0x88] sm:$0xff]  ;;  %v496_v55 = vld [vmem:[#allocation8] sm:$0xff]  ;;  %v583_v0 = vld [vmem:[#allocation5 + $0x18] sm:$0xff] }
  0x57   : > { %v304_v26 = vmax.f32 %v301_v18, %v303_v22  ;;  %v306_v27 = vmax.f32 %v302_v21, %v305_v23  ;;  %2323 = vmatpush3.msra.mxu1 %v329_v24  ;;  %v282_v32 = vadd.f32 %v281_v28, %v280_v19  ;;  %v287_v33 = vsel %vm266_vm0, %v272_v12, 0.0  ;;  %v585_v56 = vld [vmem:[#allocation5 + $0x80] sm:$0xff]  ;;  %v497_v63 = vld [vmem:[#allocation8 + $0x8] sm:$0xff]  ;;  %v582_v1 = vld [vmem:[#allocation5 + $0x10] sm:$0xff]  ;;  %s2228_s11 = sshll.u32 %s2717_s20, 8  ;;  %s260_s29 = scalar_lea.vmem [#allocation11], %s2177_s25 }
  0x58   : > { %v300_v30 = vmax.f32 %v297_v13, %v299_v20  ;;  %v285_v35 = vsel %vm266_vm0, %v277_v8, 0.0  ;;  %v288_v36 = vsel %vm266_vm0, %v274_v15, 0.0  ;;  %v290_v37 = vsel %vm266_vm0, %v276_v16, 0.0  ;;  %2334 = vmatprep.subr.mxu1 %v586_v54  ;;  %v828_v2 = vld [vmem:[#allocation5 + $0x98] sm:$0xff]  ;;  %v738_v3 = vld [vmem:[#allocation8 + $0x10] sm:$0xff]  ;;  %v825_v14 = vld [vmem:[#allocation5 + $0x28] sm:$0xff]  ;;  %s3018_s13 = scalar_lea.hbm %s3074_s4, %s2228_s11 }
  0x59   : > { %v314_v25 = vld [vmem:[#allocation3] sm:$0xff]  ;;  %v315_v31 = vld [vmem:[#allocation3 + $0x8] sm:$0xff]  ;;  %v307_v34 = vmax.f32 %v304_v26, %v306_v27  ;;  %v284_v39 = vadd.f32 %v283_v29, %v282_v32  ;;  %v289_v40 = vadd.f32 %v288_v36, %v287_v33  ;;  %v292_v43 = vsel %vm266_vm0, %v278_v17, 0.0  ;;  %v824_v15 = vld [vmem:[#allocation5 + $0x20] sm:$0xff]  ;;  %s2061_s7 = sshll.u32 %s260_s29, 4  ;;  %s2048_s14 = scalar_lea.sflag [#allocation7], %s2904_s1  ;;  %s3020_s7 = int_to_ptr.vmem [resolvable:$true] %s2061_s7 }
  0x5a   : > { %v316_v38 = vmax.f32 %v314_v25, %v300_v30  ;;  %v308_v42 = vld [vmem:[#allocation2] sm:$0xff]  ;;  %v309_v46 = vld [vmem:[#allocation2 + $0x8] sm:$0xff]  ;;  %v827_v4 = vld [vmem:[#allocation5 + $0x90] sm:$0xff]  ;;  %v328_v19 = vstv %s327_s2  ;;  %s2637_s20 = scalar_lea.vmem %s3020_s7, 256  ;;  %p3096_p12 = scmp.ne.s32.totalorder %s3083_s26, 0 }
  0x5b   : > { %v317_v41 = vmax.f32 %v315_v31, %v307_v34  ;;  %v286_v44 = vadd.f32 %v285_v35, %v284_v39  ;;  %v291_v45 = vadd.f32 %v290_v37, %v289_v40  ;;  %v739_v13 = vld [vmem:[#allocation8 + $0x18] sm:$0xff]  ;;  %v1070_v16 = vld [vmem:[#allocation5 + $0xa8] sm:$0xff]  ;;  %v980_v17 = vld [vmem:[#allocation8 + $0x20] sm:$0xff]  ;;  %p2638_p6 = scmp.ne.s32.totalorder %s3020_s7, %s2637_s20  ;;  %s2734_s15 = smov [#allocation11]  }
  0x5c   : > { %318 = vst.msk [vmem:[#allocation3] sm:$0xff] %vm266_vm0, %v316_v38  ;;  %v1069_v18 = vld [vmem:[#allocation5 + $0xa0] sm:$0xff]  ;;  %v981_v32 = vld [vmem:[#allocation8 + $0x28] sm:$0xff]  ;;  %v1067_v33 = vld [vmem:[#allocation5 + $0x38] sm:$0xff]  ;;  %s2641_s16 = sshll.u32 %s2734_s15, 4  ;;  %s2642_s16 = int_to_ptr.vmem [resolvable:$false] %s2641_s16 }
  0x5d   : > { %319 = vst.msk [vmem:[#allocation3 + $0x8] sm:$0xff] %vm266_vm0, %v317_v41  ;;  %v310_v47 = vadd.f32 %v308_v42, %v286_v44  ;;  %v293_v48 = vadd.f32 %v292_v43, %v291_v45  ;;  %v1066_v34 = vld [vmem:[#allocation5 + $0x30] sm:$0xff]  ;;  %v1312_v35 = vld [vmem:[#allocation5 + $0xb8] sm:$0xff]  ;;  %p2639_p2 = pnand %p2638_p6, %p3096_p12  ;;  %s2643_s30 = scalar_lea.vmem %s2642_s16, 512 }
  0x5e   : > { %v1222_v36 = vld [vmem:[#allocation8 + $0x30] sm:$0xff]  ;;  %p2644_p4 = scmp.lt.s32.totalorder %s3020_s7, %s2642_s16  ;;  %p2645_p1 = scmp.lt.s32.totalorder %s2643_s30, %s2637_s20 }
  0x5f   : > { %312 = vst.msk [vmem:[#allocation2] sm:$0xff] %vm266_vm0, %v310_v47  ;;  %v311_v49 = vadd.f32 %v309_v46, %v293_v48  ;;  %v1311_v37 = vld [vmem:[#allocation5 + $0xb0] sm:$0xff]  ;;  %v1223_v48 = vld [vmem:[#allocation8 + $0x38] sm:$0xff]  ;;  %p2640_p13 = pneg %p2639_p2 }
  0x60   : > { %p2646_p3 = por %p2645_p1, %p2644_p4 }
  0x61   : > { %313 = vst.msk [vmem:[#allocation2 + $0x8] sm:$0xff] %vm266_vm0, %v311_v49  ;;  %v1309_v49 = vld [vmem:[#allocation5 + $0x48] sm:$0xff] }
  0x62   : > { %p2647_p10 = pnand %p2646_p3, %p2640_p13 }
  0x63   : > { %v2935_v50 = vld [vmem:[#allocation3] sm:$0xff] }
  0x64   : > { %2317 = vmatprep.mubr.msk.f32.mxu0 %vm266_vm0, %v2935_v50  ;;  %v2939_v51 = vld [vmem:[#allocation3 + $0x8] sm:$0xff] }
  0x65   : > { %2318 = vmatmul.mubr.msk.f32.vlgmr.msra.gmra.mxu0 %vm266_vm0, %v2939_v51 }
  0x66   : > { %v2943_v52 = vld [vmem:[#allocation2] sm:$0xff]  ;;  %2331 = vmatprep.mubr.msk.f32.mxu0 %vm266_vm0, %v496_v55  ;;  %v1554_v55 = vld [vmem:[#allocation5 + $0xc8] sm:$0xff] }
  0x67   : > { %2324 = vmatprep.mubr.msk.f32.mxu1 %vm266_vm0, %v2943_v52 }
  0x68   : > { %v2947_v53 = vld [vmem:[#allocation2 + $0x8] sm:$0xff] }
  0x69   : > { %2325 = vmatmul.mubr.msk.f32.vlgmr.msra.gmra.mxu1 %vm266_vm0, %v2947_v53 }
  0x6a   : > { %2338 = vmatprep.mubr.msk.f32.mxu1 %vm266_vm0, %v2935_v50  ;;  %2335 = vmatpush3.msra.mxu1 %v586_v54  ;;  %v1308_v54 = vld [vmem:[#allocation5 + $0x40] sm:$0xff] }
  0x6b   : > { %2336 = vmatprep.subr.mxu1 %v585_v56 }
  0x6c   : > { %2337 = vmatpush3.msra.mxu1 %v585_v56  ;;  %v1464_v56 = vld [vmem:[#allocation8 + $0x40] sm:$0xff] }
  0x6d   : > { %2339 = vmatmul.mubr.msk.f32.vlgmr.msra.gmra.mxu1 %vm266_vm0, %v2939_v51 }
  0x6e   : > { %2352 = vmatprep.mubr.msk.f32.mxu1 %vm266_vm0, %v738_v3 }
 0x125   : > { %v2319_v57 = vpop.f32.mrf.mxu0 }
 0x127   : > { %v406_v60 = vpop.f32.mrf.mxu0 }
 0x129   : > { %v2326_v58 = vpop.f32.mrf.mxu1 }
 0x12a   : > { %v493_v59 = vadd.f32 %v2326_v58, %v2319_v57  ;;  %v1553_v57 = vld [vmem:[#allocation5 + $0xc0] sm:$0xff] }
 0x12b   : > { %v487_v61 = vpop.f32.mrf.mxu1 }
 0x12c   : > { %v488_v62 = vadd.f32 %v487_v61, %v406_v60  ;;  %2327 = vmatprep.subr.mxu0 %v493_v59 }
 0x12d   : > { %2328 = vmatpush3.msra.mxu0 %v493_v59  ;;  %v2340_v7 = vpop.f32.mrf.mxu1 }
 0x12e   : > { %2329 = vmatprep.subr.mxu0 %v488_v62 }
 0x12f   : > { %2330 = vmatpush3.msra.mxu0 %v488_v62  ;;  %v653_v10 = vpop.f32.mrf.mxu1 }
 0x130   : > { %2332 = vmatmul.mubr.msk.f32.vlgmr.msra.gmra.mxu0 %vm266_vm0, %v497_v63  ;;  %2341 = vmatprep.subr.mxu0 %v583_v0 }
 0x131   : > { %2342 = vmatpush3.msra.mxu0 %v583_v0  ;;  %2345 = vmatprep.mubr.msk.f32.mxu0 %vm266_vm0, %v2943_v52 }
 0x132   : > { %2343 = vmatprep.subr.mxu0 %v582_v1 }
 0x133   : > { %2344 = vmatpush3.msra.mxu0 %v582_v1 }
 0x134   : > { %2346 = vmatmul.mubr.msk.f32.vlgmr.msra.gmra.mxu0 %vm266_vm0, %v2947_v53  ;;  %2355 = vmatprep.subr.mxu0 %v828_v2 }
 0x135   : > { %2359 = vmatprep.mubr.msk.f32.mxu0 %vm266_vm0, %v2935_v50  ;;  %2356 = vmatpush3.msra.mxu0 %v828_v2 }
 0x136   : > { %2357 = vmatprep.subr.mxu0 %v827_v4 }
 0x137   : > { %2358 = vmatpush3.msra.mxu0 %v827_v4  ;;  %v1465_v4 = vld [vmem:[#allocation8 + $0x48] sm:$0xff] }
 0x138   : > { %2360 = vmatmul.mubr.msk.f32.vlgmr.msra.gmra.mxu0 %vm266_vm0, %v2939_v51 }
 0x139   : > { %2373 = vmatprep.mubr.msk.f32.mxu0 %vm266_vm0, %v980_v17 }
 0x1f0   : > { %v2333_v5 = vpop.f32.mrf.mxu0 }
 0x1f1   : > { %v580_v20 = vadd.f32 %v2333_v5, %v328_v19  ;;  %v1551_v5 = vld [vmem:[#allocation5 + $0x58] sm:$0xff] }
 0x1f2   : > { %v570_v6 = vpop.f32.mrf.mxu0 }
 0x1f3   : > { %v579_v22 = vadd.f32 %v570_v6, %v328_v19  ;;  %v1550_v6 = vld [vmem:[#allocation5 + $0x50] sm:$0xff]  ;;  %v1707_v19 = vld [vmem:[#allocation8 + $0x58] sm:$0xff] }
 0x1f4   : > { %v2347_v8 = vpop.f32.mrf.mxu0 }
 0x1f5   : > { %v734_v9 = vadd.f32 %v2347_v8, %v2340_v7  ;;  %v1796_v7 = vld [vmem:[#allocation5 + $0xd8] sm:$0xff]  ;;  %v1706_v8 = vld [vmem:[#allocation8 + $0x50] sm:$0xff] }
 0x1f6   : > { %v728_v11 = vpop.f32.mrf.mxu0 }
 0x1f7   : > { %v729_v12 = vadd.f32 %v728_v11, %v653_v10  ;;  %2348 = vmatprep.subr.mxu1 %v734_v9 }
 0x1f8   : > { %2349 = vmatpush3.msra.mxu1 %v734_v9  ;;  %v2361_v25 = vpop.f32.mrf.mxu0  ;;  %v1795_v9 = vld [vmem:[#allocation5 + $0xd0] sm:$0xff] }
 0x1f9   : > { %2350 = vmatprep.subr.mxu1 %v729_v12 }
 0x1fa   : > { %2351 = vmatpush3.msra.mxu1 %v729_v12  ;;  %v895_v29 = vpop.f32.mrf.mxu0 }
 0x1fb   : > { %2353 = vmatmul.mubr.msk.f32.vlgmr.msra.gmra.mxu1 %vm266_vm0, %v739_v13  ;;  %2362 = vmatprep.subr.mxu1 %v825_v14 }
 0x1fc   : > { %2363 = vmatpush3.msra.mxu1 %v825_v14  ;;  %2366 = vmatprep.mubr.msk.f32.mxu1 %vm266_vm0, %v2943_v52 }
 0x1fd   : > { %2364 = vmatprep.subr.mxu1 %v824_v15 }
 0x1fe   : > { %2365 = vmatpush3.msra.mxu1 %v824_v15 }
 0x1ff   : > { %2367 = vmatmul.mubr.msk.f32.vlgmr.msra.gmra.mxu1 %vm266_vm0, %v2947_v53  ;;  %2376 = vmatprep.subr.mxu1 %v1070_v16 }
 0x200   : > { %2380 = vmatprep.mubr.msk.f32.mxu1 %vm266_vm0, %v2935_v50  ;;  %2377 = vmatpush3.msra.mxu1 %v1070_v16 }
 0x201   : > { %2378 = vmatprep.subr.mxu1 %v1069_v18 }
 0x202   : > { %2379 = vmatpush3.msra.mxu1 %v1069_v18 }
 0x203   : > { %2381 = vmatmul.mubr.msk.f32.vlgmr.msra.gmra.mxu1 %vm266_vm0, %v2939_v51 }
 0x204   : > { %2394 = vmatprep.mubr.msk.f32.mxu1 %vm266_vm0, %v1222_v36 }
 0x2bb   : > { %v2354_v21 = vpop.f32.mrf.mxu1 }
 0x2bc   : > { %v822_v23 = vadd.f32 %v2354_v21, %v580_v20  ;;  %v1793_v20 = vld [vmem:[#allocation5 + $0x68] sm:$0xff]  ;;  %v1792_v21 = vld [vmem:[#allocation5 + $0x60] sm:$0xff] }
 0x2bd   : > { %v812_v24 = vpop.f32.mrf.mxu1 }
 0x2be   : > { %v821_v26 = vadd.f32 %v812_v24, %v579_v22 }
 0x2bf   : > { %v2368_v27 = vpop.f32.mrf.mxu1 }
 0x2c0   : > { %v976_v28 = vadd.f32 %v2368_v27, %v2361_v25 }
 0x2c1   : > { %v970_v30 = vpop.f32.mrf.mxu1 }
 0x2c2   : > { %v971_v31 = vadd.f32 %v970_v30, %v895_v29  ;;  %2369 = vmatprep.subr.mxu0 %v976_v28 }
 0x2c3   : > { %2370 = vmatpush3.msra.mxu0 %v976_v28  ;;  %v2382_v41 = vpop.f32.mrf.mxu1 }
 0x2c4   : > { %2371 = vmatprep.subr.mxu0 %v971_v31 }
 0x2c5   : > { %2372 = vmatpush3.msra.mxu0 %v971_v31  ;;  %v1137_v45 = vpop.f32.mrf.mxu1 }
 0x2c6   : > { %2374 = vmatmul.mubr.msk.f32.vlgmr.msra.gmra.mxu0 %vm266_vm0, %v981_v32  ;;  %2383 = vmatprep.subr.mxu0 %v1067_v33 }
 0x2c7   : > { %2384 = vmatpush3.msra.mxu0 %v1067_v33  ;;  %2387 = vmatprep.mubr.msk.f32.mxu0 %vm266_vm0, %v2943_v52 }
 0x2c8   : > { %2385 = vmatprep.subr.mxu0 %v1066_v34 }
 0x2c9   : > { %2386 = vmatpush3.msra.mxu0 %v1066_v34 }
 0x2ca   : > { %2388 = vmatmul.mubr.msk.f32.vlgmr.msra.gmra.mxu0 %vm266_vm0, %v2947_v53  ;;  %2397 = vmatprep.subr.mxu0 %v1312_v35 }
 0x2cb   : > { %2401 = vmatprep.mubr.msk.f32.mxu0 %vm266_vm0, %v2935_v50  ;;  %2398 = vmatpush3.msra.mxu0 %v1312_v35 }
 0x2cc   : > { %2399 = vmatprep.subr.mxu0 %v1311_v37 }
 0x2cd   : > { %2400 = vmatpush3.msra.mxu0 %v1311_v37 }
 0x2ce   : > { %2402 = vmatmul.mubr.msk.f32.vlgmr.msra.gmra.mxu0 %vm266_vm0, %v2939_v51 }
 0x2cf   : > { %2415 = vmatprep.mubr.msk.f32.mxu0 %vm266_vm0, %v1464_v56 }
 0x386   : > { %v2375_v38 = vpop.f32.mrf.mxu0 }
 0x387   : > { %v1064_v39 = vadd.f32 %v2375_v38, %v822_v23 }
 0x388   : > { %v1054_v40 = vpop.f32.mrf.mxu0 }
 0x389   : > { %v1063_v42 = vadd.f32 %v1054_v40, %v821_v26 }
 0x38a   : > { %v2389_v43 = vpop.f32.mrf.mxu0 }
 0x38b   : > { %v1218_v44 = vadd.f32 %v2389_v43, %v2382_v41 }
 0x38c   : > { %v1212_v46 = vpop.f32.mrf.mxu0 }
 0x38d   : > { %v1213_v47 = vadd.f32 %v1212_v46, %v1137_v45  ;;  %2390 = vmatprep.subr.mxu1 %v1218_v44 }
 0x38e   : > { %2391 = vmatpush3.msra.mxu1 %v1218_v44  ;;  %v2403_v61 = vpop.f32.mrf.mxu0 }
 0x38f   : > { %2392 = vmatprep.subr.mxu1 %v1213_v47 }
 0x390   : > { %2393 = vmatpush3.msra.mxu1 %v1213_v47  ;;  %v1379_v1 = vpop.f32.mrf.mxu0 }
 0x391   : > { %2395 = vmatmul.mubr.msk.f32.vlgmr.msra.gmra.mxu1 %vm266_vm0, %v1223_v48  ;;  %2404 = vmatprep.subr.mxu1 %v1309_v49 }
 0x392   : > { %2405 = vmatpush3.msra.mxu1 %v1309_v49  ;;  %2408 = vmatprep.mubr.msk.f32.mxu1 %vm266_vm0, %v2943_v52 }
 0x393   : > { %2406 = vmatprep.subr.mxu1 %v1308_v54 }
 0x394   : > { %2407 = vmatpush3.msra.mxu1 %v1308_v54 }
 0x395   : > { %2409 = vmatmul.mubr.msk.f32.vlgmr.msra.gmra.mxu1 %vm266_vm0, %v2947_v53  ;;  %2418 = vmatprep.subr.mxu1 %v1554_v55 }
 0x396   : > { %2422 = vmatprep.mubr.msk.f32.mxu1 %vm266_vm0, %v2935_v50  ;;  %2419 = vmatpush3.msra.mxu1 %v1554_v55 }
 0x397   : > { %2420 = vmatprep.subr.mxu1 %v1553_v57 }
 0x398   : > { %2421 = vmatpush3.msra.mxu1 %v1553_v57 }
 0x399   : > { %2423 = vmatmul.mubr.msk.f32.vlgmr.msra.gmra.mxu1 %vm266_vm0, %v2939_v51 }
 0x39a   : > { %2436 = vmatprep.mubr.msk.f32.mxu1 %vm266_vm0, %v1706_v8 }
 0x451   : > { %v2396_v58 = vpop.f32.mrf.mxu1 }
 0x452   : > { %v1306_v59 = vadd.f32 %v2396_v58, %v1064_v39 }
 0x453   : > { %v1296_v60 = vpop.f32.mrf.mxu1 }
 0x454   : > { %v1305_v62 = vadd.f32 %v1296_v60, %v1063_v42 }
 0x455   : > { %v2410_v63 = vpop.f32.mrf.mxu1 }
 0x456   : > { %v1460_v0 = vadd.f32 %v2410_v63, %v2403_v61 }
 0x457   : > { %v1454_v2 = vpop.f32.mrf.mxu1 }
 0x458   : > { %v1455_v3 = vadd.f32 %v1454_v2, %v1379_v1  ;;  %2411 = vmatprep.subr.mxu0 %v1460_v0 }
 0x459   : > { %2412 = vmatpush3.msra.mxu0 %v1460_v0  ;;  %v2424_v13 = vpop.f32.mrf.mxu1 }
 0x45a   : > { %2413 = vmatprep.subr.mxu0 %v1455_v3 }
 0x45b   : > { %2414 = vmatpush3.msra.mxu0 %v1455_v3 }
 0x45c   : > { %2416 = vmatmul.mubr.msk.f32.vlgmr.msra.gmra.mxu0 %vm266_vm0, %v1465_v4  ;;  %2425 = vmatprep.subr.mxu0 %v1551_v5 }
 0x45d   : > { %2426 = vmatpush3.msra.mxu0 %v1551_v5  ;;  %2429 = vmatprep.mubr.msk.f32.mxu0 %vm266_vm0, %v2943_v52 }
 0x45e   : > { %2427 = vmatprep.subr.mxu0 %v1550_v6 }
 0x45f   : > { %2428 = vmatpush3.msra.mxu0 %v1550_v6 }
 0x460   : > { %2430 = vmatmul.mubr.msk.f32.vlgmr.msra.gmra.mxu0 %vm266_vm0, %v2947_v53  ;;  %2439 = vmatprep.subr.mxu0 %v1796_v7 }
 0x461   : > { %2443 = vmatprep.mubr.msk.f32.mxu0 %vm266_vm0, %v2935_v50  ;;  %2440 = vmatpush3.msra.mxu0 %v1796_v7  ;;  %v1621_v50 = vpop.f32.mrf.mxu1 }
 0x462   : > { %2441 = vmatprep.subr.mxu0 %v1795_v9 }
 0x463   : > { %2442 = vmatpush3.msra.mxu0 %v1795_v9 }
 0x464   : > { %2444 = vmatmul.mubr.msk.f32.vlgmr.msra.gmra.mxu0 %vm266_vm0, %v2939_v51  ;;  %v1948_v51 = vld [vmem:[#allocation8 + $0x60] sm:$0xff] }
 0x465   : > { %2457 = vmatprep.mubr.msk.f32.mxu0 %vm266_vm0, %v1948_v51 }
 0x51c   : > { %v2417_v10 = vpop.f32.mrf.mxu0 }
 0x51d   : > { %v1548_v11 = vadd.f32 %v2417_v10, %v1306_v59 }
 0x51e   : > { %v1538_v12 = vpop.f32.mrf.mxu0 }
 0x51f   : > { %v1547_v14 = vadd.f32 %v1538_v12, %v1305_v62 }
 0x520   : > { %v2431_v15 = vpop.f32.mrf.mxu0 }
 0x521   : > { %v1702_v16 = vadd.f32 %v2431_v15, %v2424_v13 }
 0x522   : > { %v1696_v17 = vpop.f32.mrf.mxu0 }
 0x523   : > { %v1697_v18 = vadd.f32 %v1696_v17, %v1621_v50  ;;  %2432 = vmatprep.subr.mxu1 %v1702_v16 }
 0x524   : > { %2433 = vmatpush3.msra.mxu1 %v1702_v16  ;;  %v2445_v25 = vpop.f32.mrf.mxu0 }
 0x525   : > { %2434 = vmatprep.subr.mxu1 %v1697_v18 }
 0x526   : > { %2435 = vmatpush3.msra.mxu1 %v1697_v18  ;;  %v1863_v29 = vpop.f32.mrf.mxu0 }
 0x527   : > { %2437 = vmatmul.mubr.msk.f32.vlgmr.msra.gmra.mxu1 %vm266_vm0, %v1707_v19  ;;  %2446 = vmatprep.subr.mxu1 %v1793_v20 }
 0x528   : > { %2447 = vmatpush3.msra.mxu1 %v1793_v20  ;;  %2450 = vmatprep.mubr.msk.f32.mxu1 %vm266_vm0, %v2943_v52  ;;  %v1949_v52 = vld [vmem:[#allocation8 + $0x68] sm:$0xff] }
 0x529   : > { %2448 = vmatprep.subr.mxu1 %v1792_v21 }
 0x52a   : > { %2449 = vmatpush3.msra.mxu1 %v1792_v21 }
 0x52b   : > { %2451 = vmatmul.mubr.msk.f32.vlgmr.msra.gmra.mxu1 %vm266_vm0, %v2947_v53 }
 0x5e7   : > { %v2438_v22 = vpop.f32.mrf.mxu1 }
 0x5e8   : > { %v1790_v23 = vadd.f32 %v2438_v22, %v1548_v11 }
 0x5e9   : > { %v1780_v24 = vpop.f32.mrf.mxu1 }
 0x5ea   : > { %v1789_v26 = vadd.f32 %v1780_v24, %v1547_v14 }
 0x5eb   : > { %v2452_v27 = vpop.f32.mrf.mxu1 }
 0x5ec   : > { %v1944_v28 = vadd.f32 %v2452_v27, %v2445_v25 }
 0x5ed   : > { %v1938_v30 = vpop.f32.mrf.mxu1 }
 0x5ee   : > { %v1939_v31 = vadd.f32 %v1938_v30, %v1863_v29  ;;  %2453 = vmatprep.subr.mxu0 %v1944_v28 }
 0x5ef   : > { %2454 = vmatpush3.msra.mxu0 %v1944_v28 }
 0x5f0   : > { %2455 = vmatprep.subr.mxu0 %v1939_v31 }
 0x5f1   : > { %2456 = vmatpush3.msra.mxu0 %v1939_v31 }
 0x5f2   : > { %2458 = vmatmul.mubr.msk.f32.vlgmr.msra.gmra.mxu0 %vm266_vm0, %v1949_v52 }
 0x6b2   : > { %v2459_v53 = vpop.f32.mrf.mxu0 }
 0x6b3   : > { %v2032_v32 = vadd.f32 %v2459_v53, %v1790_v23 }
 0x6b4   : > { %v2022_v33 = vpop.f32.mrf.mxu0 }
 0x6b5   : > { %v2221_v34 = vmul.f32 -1.442695, %v2032_v32  ;;  %v2031_v35 = vadd.f32 %v2022_v33, %v1789_v26 }
 0x6b7   : > { %2549 = vpow2.f32 %v2221_v34  ;;  %v2220_v36 = vmul.f32 -1.442695, %v2031_v35 }
 0x6b9   : > { %2551 = vpow2.f32 %v2220_v36 }
 0x6c4   : > { %v2550_v37 = vpop.eup %2549 }
 0x6c5   : > { %v2040_v38 = vadd.f32 1.0, %v2550_v37 }
 0x6c6   : > { %v2552_v39 = vpop.eup %2551 }
 0x6c7   : > { %2553 = vrcp.f32 %v2040_v38  ;;  %v2039_v40 = vadd.f32 1.0, %v2552_v39 }
 0x6c9   : > { %2555 = vrcp.f32 %v2039_v40 }
 0x6d4   : > { %v2554_v41 = vpop.eup %2553 }
 0x6d5   : > { %2046 = vst.msk [vmem:[%s260_s29 + $0x8] sm:$0xff] %vm266_vm0, %v2554_v41 }
 0x6d6   : > { %v2556_v42 = vpop.eup %2555 }
 0x6d7   : > { %2045 = vst.msk [vmem:[%s260_s29] sm:$0xff] %vm266_vm0, %v2556_v42 }
 0x6d8   : > { %2650 = shalt.err (!%p2647_p10)
}
 0x6d9   : > { %s2651_s23 = scalar_lea.hbm %s3018_s13, 256  ;;  %s2655_s28 = scalar_lea.hbm %s3074_s4, 512 }
 0x6da   : > { %p2652_p8 = scmp.ne.s32.totalorder %s3018_s13, %s2651_s23  ;;  %p2656_p7 = scmp.lt.s32.totalorder %s3018_s13, %s3074_s4 }
 0x6db   : > { %p2657_p11 = scmp.lt.s32.totalorder %s2655_s28, %s2651_s23 }
 0x6dc   : > { %p2653_p0 = pnand %p2652_p8, %p3096_p12 }
 0x6dd   : > { %p2658_p5 = por %p2657_p11, %p2656_p7 }
 0x6de   : > { %p2654_p9 = pneg %p2653_p0 }
 0x6e0   : > { %p2659_p6 = pnand %p2658_p5, %p2654_p9 }
 0x6e2   : > { %2662 = shalt.err (!%p2659_p6)
}
 0x6e3   : > { %s2735_s2 = smov 128   ;;  %s2736_s25 = smov 8  }
 0x6e4   : > { %2470 = dma.vmem_to_hbm [thread:$0]  (%p3096_p12), %s3020_s7, 256, %s3018_s13, %s2048_s14, %s2735_s2, %s2735_s2, %s2736_s25  }
 0x6e5 PF: > { %s2076_s11 = sand.u32 1, %s2705_s17   ;;  %p3097_p2 = scmp.ne.s32.totalorder %s3084_s27, 0 }
 0x6e6   : > { %p3098_p13 = scmp.ge.s32.totalorder %s2725_s22, 2  ;;  %s2077_s29 = scalar_lea.sflag [#allocation7], %s2076_s11 }
 0x6e8   : > { %p2484_p4 = pnand %p3098_p13, %p3097_p2 }
 0x6ea   : > { %p2485_p1 = pneg %p2484_p4 }
 0x6ec   : > { %2700 = dma.done.wait (%p2485_p1), %s2077_s29, 256  }
 0x6ed   : > { %2702 = vsyncadd (%p2485_p1), %s2077_s29, 4294967040  ;;  %s20_s22 = sadd.s32 1, %s2725_s22   ;;  %s3099_s17 = smov %s2709_s18 }
 0x6ee   : > { %p17_p3 = scmp.ge.s32.totalorder %s20_s22, 4   ;;  %s3100_s18 = smov %s2713_s19 }
 0x6ef   : > { %s3101_s19 = smov %s2883_s8  ;;  %s3102_s20 = smov %s2721_s21 }
 0x6f0   : > { %s3103_s21 = smov %s3105_s24  ;;  %19 = sbr.rel (!%p17_p3) target bundleno = 10 (0xa), region = 115 }
 0x6f5   :  { %2082 = vsyncpa [#allocation6], 1 }
 0x6f6   :  { %2084 = vsyncpa [#allocation6 + $0x1], 1 }
 0x6f7   :  { %2085 = vsyncpa [#allocation9], 1 }
 0x6f8   :  { %2086 = vsyncpa [#allocation7], 1 }
 0x6f9   :  { %2088 = vsyncpa [#allocation7 + $0x1], 1 }

</bundles_post_ra>
